<compile_context>
chip_gen: v7x
topology: tpu7x:2x2x1
jax: 0.10.0
libtpu: 0.0.40
codegen_flags: <defaults>
</compile_context>

<pallas_src>
import math

import numpy as np
import jax
import jax.numpy as jnp
from jax.experimental import pallas as pl
from jax.experimental.pallas import tpu as pltpu

# ---- model hyperparameters (match the PyTorch module's globals/defaults) ----
NHEAD = 16          # module-level `nhead`
D_MODEL = 64        # divisible by nhead=16 -> head_dim = 4
DIM_FF = 128        # small dim_feedforward for the synthetic example
LN_EPS = 1e-5
SEQ_LEN = 8
BATCH = 2
NEG_INF = -1e30


def _encoder_layer_kernel(x_ref,
                          wqkv_ref, bqkv_ref,      # in_proj (pre-T, scale-folded): (E,3E) bf16, (1,3E) f32
                          wo_ref, bo_ref,          # out_proj (pre-T): (E,E) bf16, (1,E) f32
                          w1_ref, b1_ref,          # linear1 (pre-T): (E,F) bf16, (1,F) f32
                          w2_ref, b2_ref,          # linear2 (pre-T): (F,E) bf16, (1,E) f32
                          g1_ref, be1_ref,         # norm1 gamma/beta: (1,E) f32
                          g2_ref, be2_ref,         # norm2 gamma/beta: (1,E) f32
                          sel_ref,                 # (R, H*R)  bf16: [j % R == s]
                          selt_ref,                # (H*R, R)  bf16: [j % R == s]
                          hmk_ref,                 # (E, H*R)  bf16: [c//hd == j//R]
                          hmv_ref,                 # (H*R, E)  bf16: [j//R == c//hd]
                          amask_ref,               # (R, H*R)  f32 : 0 / -1e30 batch mask
                          o_ref):
    f32, bf16 = jnp.float32, jnp.bfloat16
    x = x_ref[...]                                 # (R, E) f32, row r = (l, n) with n = r % BATCH
    _, E = x.shape

    # ---- fused QKV projection (head scaling already folded into the Q columns) ----
    qkv = jnp.dot(x.astype(bf16), wqkv_ref[...],
                  preferred_element_type=f32) + bqkv_ref[...]         # (R, 3E) f32
    q = qkv[:, :E]
    k = qkv[:, E:2 * E]
    v = qkv[:, 2 * E:]

    # ---- all-head attention via block-expanded K / V (2-D MXU matmuls only) ----
    # KB[c, h*R+s] = k[s, c] * (c // hd == h)      -> (E, H*R)
    kb = (jnp.dot(k.T.astype(bf16), sel_ref[...], preferred_element_type=f32)
          * hmk_ref[...]).astype(bf16)
    # scores[r, h*R+s] = <q[r, head h], k[s, head h]>, cross-batch keys masked additively
    s = jnp.dot(q.astype(bf16), kb, preferred_element_type=f32) + amask_ref[...]
    s = s - jnp.max(s, axis=-1, keepdims=True)
    p = jnp.exp(s).astype(bf16)                                        # unnormalised probs (R, H*R)

    # VB[h*R+s, c] = v[s, c] * (c // hd == h)      -> (H*R, E)
    vb = (jnp.dot(selt_ref[...], v.astype(bf16), preferred_element_type=f32)
          * hmv_ref[...]).astype(bf16)
    ctx = jnp.dot(p, vb, preferred_element_type=f32)                   # (R, E) unnormalised
    # per-head softmax denominator, broadcast to that head's hd lanes, via the same head mask
    den = jnp.dot(p, hmv_ref[...], preferred_element_type=f32)         # (R, E)
    ctx = ctx * pl.reciprocal(den, approx=True)

    attn = jnp.dot(ctx.astype(bf16), wo_ref[...],
                   preferred_element_type=f32) + bo_ref[...]           # (R, E)

    # ---- residual + LayerNorm 1 (f32) ----
    r1 = x + attn
    mu1 = jnp.mean(r1, axis=-1, keepdims=True)
    var1 = jnp.mean(jnp.square(r1 - mu1), axis=-1, keepdims=True)
    y1 = (r1 - mu1) * jax.lax.rsqrt(var1 + LN_EPS) * g1_ref[...] + be1_ref[...]

    # ---- feed-forward: linear1 -> relu -> linear2 ----
    h1 = jnp.maximum(
        jnp.dot(y1.astype(bf16), w1_ref[...], preferred_element_type=f32) + b1_ref[...],
        0.0)
    y2 = jnp.dot(h1.astype(bf16), w2_ref[...], preferred_element_type=f32) + b2_ref[...]

    # ---- residual + LayerNorm 2 (f32) ----
    r2 = y1 + y2
    mu2 = jnp.mean(r2, axis=-1, keepdims=True)
    var2 = jnp.mean(jnp.square(r2 - mu2), axis=-1, keepdims=True)
    o_ref[...] = (r2 - mu2) * jax.lax.rsqrt(var2 + LN_EPS) * g2_ref[...] + be2_ref[...]


def _attn_constants(L, N, E, H):
    """Host-precomputed 0/1 selection & mask matrices for the block-expanded attention."""
    R = L * N
    hd = E // H
    HR = H * R
    j = np.arange(HR)
    s_of_j = j % R                       # key row selected by expanded column j
    h_of_j = j // R                      # head owning expanded column j
    h_of_c = np.arange(E) // hd          # head owning embedding column c
    r = np.arange(R)

    sel = (s_of_j[None, :] == r[:, None]).astype(np.float32)           # (R, HR)
    selt = sel.T.copy()                                                # (HR, R)
    hm_k = (h_of_c[:, None] == h_of_j[None, :]).astype(np.float32)     # (E, HR)
    hm_v = hm_k.T.copy()                                               # (HR, E)
    # rows of x are ordered (l, n) with n = r % N -> batch mask on the selected key row
    addmask = np.where((r[:, None] % N) == (s_of_j[None, :] % N),
                       0.0, NEG_INF).astype(np.float32)                # (R, HR)
    return (jnp.asarray(sel, jnp.bfloat16), jnp.asarray(selt, jnp.bfloat16),
            jnp.asarray(hm_k, jnp.bfloat16), jnp.asarray(hm_v, jnp.bfloat16),
            jnp.asarray(addmask, jnp.float32))


@jax.jit
def transformer_encoder_layer(src, params):
    """TransformerEncoderLayer forward (dropout = identity). src: (L, N, E) f32 -> (L, N, E) f32."""
    L, N, E = src.shape
    H = NHEAD
    scale = 1.0 / math.sqrt(E // H)

    # --- one-off host-side weight prep ---
    #  * transpose all weights to (in, out) so the kernel never transposes weights,
    #  * fold the 1/sqrt(head_dim) scaling into the Q slice of in_proj (weight AND bias),
    #  * cast matmul weights to bf16 (f32 accumulation on the MXU).
    q_scale = jnp.concatenate([jnp.full((E,), scale, jnp.float32),
                               jnp.ones((2 * E,), jnp.float32)])
    wqkv = (params["in_proj_w"] * q_scale[:, None]).T.astype(jnp.bfloat16)   # (E, 3E)
    bqkv = params["in_proj_b"] * q_scale[None, :]                            # (1, 3E)
    wo = params["out_proj_w"].T.astype(jnp.bfloat16)                         # (E, E)
    w1 = params["lin1_w"].T.astype(jnp.bfloat16)                             # (E, F)
    w2 = params["lin2_w"].T.astype(jnp.bfloat16)                             # (F, E)

    sel, selt, hm_k, hm_v, addmask = _attn_constants(L, N, E, H)

    # (L, N, E) -> (L*N, E) is a free reshape (no HBM transpose); row r -> batch n = r % N.
    x2d = src.reshape(L * N, E)

    out2d = pl.pallas_call(
        _encoder_layer_kernel,
        out_shape=jax.ShapeDtypeStruct((L * N, E), jnp.float32),
        compiler_params=pltpu.CompilerParams(vmem_limit_bytes=32 * 1024 * 1024),
    )(x2d,
      wqkv, bqkv, wo, params["out_proj_b"],
      w1, params["lin1_b"], w2, params["lin2_b"],
      params["norm1_g"], params["norm1_b"], params["norm2_g"], params["norm2_b"],
      sel, selt, hm_k, hm_v, addmask)

    return out2d.reshape(L, N, E)


# ---------------------------------------------------------------------------
# parameter init (mirrors the PyTorch module's init closely enough for a demo)
# ---------------------------------------------------------------------------
def _xavier_uniform(key, shape):
    fan_out, fan_in = shape
    limit = math.sqrt(6.0 / (fan_in + fan_out))
    return jax.random.uniform(key, shape, jnp.float32, -limit, limit)


def init_params(key):
    ks = jax.random.split(key, 4)
    E, F = D_MODEL, DIM_FF
    return {
        # MultiheadAttention (biases constant_ 0.0 in _reset_parameters)
        "in_proj_w": _xavier_uniform(ks[0], (3 * E, E)),
        "in_proj_b": jnp.zeros((1, 3 * E), jnp.float32),
        "out_proj_w": _xavier_uniform(ks[1], (E, E)),
        "out_proj_b": jnp.zeros((1, E), jnp.float32),
        # feed-forward Linear layers
        "lin1_w": _xavier_uniform(ks[2], (F, E)),
        "lin1_b": jnp.zeros((1, F), jnp.float32),
        "lin2_w": _xavier_uniform(ks[3], (E, F)),
        "lin2_b": jnp.zeros((1, E), jnp.float32),
        # LayerNorms (PyTorch default init: weight=1, bias=0)
        "norm1_g": jnp.ones((1, E), jnp.float32),
        "norm1_b": jnp.zeros((1, E), jnp.float32),
        "norm2_g": jnp.ones((1, E), jnp.float32),
        "norm2_b": jnp.zeros((1, E), jnp.float32),
    }


# ---------------------------------------------------------------------------
# pure-JAX (f32) reference of the same forward, for a correctness check
# ---------------------------------------------------------------------------
def _layer_norm_ref(x, g, b):
    mu = jnp.mean(x, axis=-1, keepdims=True)
    var = jnp.mean((x - mu) ** 2, axis=-1, keepdims=True)
    return (x - mu) * jax.lax.rsqrt(var + LN_EPS) * g + b


def reference_forward(src, params):
    L, N, E = src.shape
    H = NHEAD
    hd = E // H
    scale = 1.0 / math.sqrt(hd)
    qkv = jnp.einsum('lne,fe->lnf', src, params["in_proj_w"]) + params["in_proj_b"][0]
    q = (qkv[..., :E] * scale).reshape(L, N, H, hd)
    k = qkv[..., E:2 * E].reshape(L, N, H, hd)
    v = qkv[..., 2 * E:].reshape(L, N, H, hd)
    s = jnp.einsum('lnhd,mnhd->nhlm', q, k)
    p = jax.nn.softmax(s, axis=-1)
    ctx = jnp.einsum('nhlm,mnhd->lnhd', p, v).reshape(L, N, E)
    attn = ctx @ params["out_proj_w"].T + params["out_proj_b"][0]
    y1 = _layer_norm_ref(src + attn, params["norm1_g"][0], params["norm1_b"][0])
    h1 = jnp.maximum(y1 @ params["lin1_w"].T + params["lin1_b"][0], 0.0)
    y2 = h1 @ params["lin2_w"].T + params["lin2_b"][0]
    return _layer_norm_ref(y1 + y2, params["norm2_g"][0], params["norm2_b"][0])


if __name__ == "__main__":
    key = jax.random.PRNGKey(0)
    k_src, k_params = jax.random.split(key)

    src = jax.random.normal(k_src, (SEQ_LEN, BATCH, D_MODEL), jnp.float32)
    params = init_params(k_params)

    out = jax.block_until_ready(transformer_encoder_layer(src, params))
    assert out.shape == (SEQ_LEN, BATCH, D_MODEL)
    assert jnp.all(jnp.isfinite(out))

    ref = jax.block_until_ready(reference_forward(src, params))
    max_err = float(jnp.max(jnp.abs(out - ref)))
    assert max_err < 0.15, f"max |err| vs reference = {max_err}"

    print("KERNEL_OK")
</pallas_src>

<mosaic_0001>
module attributes {stable_mosaic.version = 11 : i64} {
  func.func @_encoder_layer_kernel(%arg0: memref<16x64xf32, #tpu.memory_space<vmem>>, %arg1: memref<64x192xbf16, #tpu.memory_space<vmem>>, %arg2: memref<1x192xf32, #tpu.memory_space<vmem>>, %arg3: memref<64x64xbf16, #tpu.memory_space<vmem>>, %arg4: memref<1x64xf32, #tpu.memory_space<vmem>>, %arg5: memref<64x128xbf16, #tpu.memory_space<vmem>>, %arg6: memref<1x128xf32, #tpu.memory_space<vmem>>, %arg7: memref<128x64xbf16, #tpu.memory_space<vmem>>, %arg8: memref<1x64xf32, #tpu.memory_space<vmem>>, %arg9: memref<1x64xf32, #tpu.memory_space<vmem>>, %arg10: memref<1x64xf32, #tpu.memory_space<vmem>>, %arg11: memref<1x64xf32, #tpu.memory_space<vmem>>, %arg12: memref<1x64xf32, #tpu.memory_space<vmem>>, %arg13: memref<16x256xbf16, #tpu.memory_space<vmem>>, %arg14: memref<256x16xbf16, #tpu.memory_space<vmem>>, %arg15: memref<64x256xbf16, #tpu.memory_space<vmem>>, %arg16: memref<256x64xbf16, #tpu.memory_space<vmem>>, %arg17: memref<16x256xf32, #tpu.memory_space<vmem>>, %arg18: memref<16x64xf32, #tpu.memory_space<vmem>>) attributes {dimension_semantics = [], scalar_prefetch = 0 : i64, scratch_operands = 0 : i64, tpu.core_type = #tpu.core_type<tc>} {
    %c0 = arith.constant 0 : index
    %c0_0 = arith.constant 0 : index
    %0 = vector.load %arg0[%c0, %c0_0] : memref<16x64xf32, #tpu.memory_space<vmem>>, vector<16x64xf32>
    %1 = arith.truncf %0 : vector<16x64xf32> to vector<16x64xbf16>
    %c0_1 = arith.constant 0 : index
    %c0_2 = arith.constant 0 : index
    %2 = vector.load %arg1[%c0_1, %c0_2] : memref<64x192xbf16, #tpu.memory_space<vmem>>, vector<64x192xbf16>
    %cst = arith.constant dense<0.000000e+00> : vector<16x192xf32>
    %3 = tpu.matmul %1, %2, %cst {dimension_numbers = #tpu.dot_dimension_numbers<[1], [0], [0], [1], [0, 0, 1, 1], [], []>} : vector<16x64xbf16>, vector<64x192xbf16>, vector<16x192xf32> -> vector<16x192xf32>
    %c0_3 = arith.constant 0 : index
    %c0_4 = arith.constant 0 : index
    %4 = vector.load %arg2[%c0_3, %c0_4] : memref<1x192xf32, #tpu.memory_space<vmem>>, vector<1x192xf32>
    %5 = vector.broadcast %4 : vector<1x192xf32> to vector<16x192xf32>
    %6 = arith.addf %3, %5 : vector<16x192xf32>
    %7 = vector.extract_strided_slice %6 {offsets = [0, 0], sizes = [16, 64], strides = [1, 1]} : vector<16x192xf32> to vector<16x64xf32>
    %8 = vector.extract_strided_slice %6 {offsets = [0, 64], sizes = [16, 64], strides = [1, 1]} : vector<16x192xf32> to vector<16x64xf32>
    %9 = vector.extract_strided_slice %6 {offsets = [0, 128], sizes = [16, 64], strides = [1, 1]} : vector<16x192xf32> to vector<16x64xf32>
    %10 = tpu.transpose %8, [1, 0] : vector<16x64xf32> -> vector<64x16xf32>
    %11 = arith.truncf %10 : vector<64x16xf32> to vector<64x16xbf16>
    %c0_5 = arith.constant 0 : index
    %c0_6 = arith.constant 0 : index
    %12 = vector.load %arg13[%c0_5, %c0_6] : memref<16x256xbf16, #tpu.memory_space<vmem>>, vector<16x256xbf16>
    %cst_7 = arith.constant dense<0.000000e+00> : vector<64x256xf32>
    %13 = tpu.matmul %11, %12, %cst_7 {dimension_numbers = #tpu.dot_dimension_numbers<[1], [0], [0], [1], [0, 0, 1, 1], [], []>} : vector<64x16xbf16>, vector<16x256xbf16>, vector<64x256xf32> -> vector<64x256xf32>
    %c0_8 = arith.constant 0 : index
    %c0_9 = arith.constant 0 : index
    %14 = vector.load %arg15[%c0_8, %c0_9] : memref<64x256xbf16, #tpu.memory_space<vmem>>, vector<64x256xbf16>
    %15 = arith.extf %14 : vector<64x256xbf16> to vector<64x256xf32>
    %16 = arith.mulf %13, %15 : vector<64x256xf32>
    %17 = arith.truncf %16 : vector<64x256xf32> to vector<64x256xbf16>
    %18 = arith.truncf %7 : vector<16x64xf32> to vector<16x64xbf16>
    %cst_10 = arith.constant dense<0.000000e+00> : vector<16x256xf32>
    %19 = tpu.matmul %18, %17, %cst_10 {dimension_numbers = #tpu.dot_dimension_numbers<[1], [0], [0], [1], [0, 0, 1, 1], [], []>} : vector<16x64xbf16>, vector<64x256xbf16>, vector<16x256xf32> -> vector<16x256xf32>
    %c0_11 = arith.constant 0 : index
    %c0_12 = arith.constant 0 : index
    %20 = vector.load %arg17[%c0_11, %c0_12] : memref<16x256xf32, #tpu.memory_space<vmem>>, vector<16x256xf32>
    %21 = arith.addf %19, %20 : vector<16x256xf32>
    %cst_13 = arith.constant dense<0xFF800000> : vector<16xf32>
    %22 = vector.multi_reduction <maximumf>, %21, %cst_13 [1] : vector<16x256xf32> to vector<16xf32>
    %23 = vector.shape_cast %22 : vector<16xf32> to vector<16x1xf32>
    %24 = vector.broadcast %23 : vector<16x1xf32> to vector<16x256xf32>
    %25 = arith.subf %21, %24 : vector<16x256xf32>
    %26 = math.exp %25 : vector<16x256xf32>
    %27 = arith.truncf %26 : vector<16x256xf32> to vector<16x256xbf16>
    %c0_14 = arith.constant 0 : index
    %c0_15 = arith.constant 0 : index
    %28 = vector.load %arg14[%c0_14, %c0_15] : memref<256x16xbf16, #tpu.memory_space<vmem>>, vector<256x16xbf16>
    %29 = arith.truncf %9 : vector<16x64xf32> to vector<16x64xbf16>
    %cst_16 = arith.constant dense<0.000000e+00> : vector<256x64xf32>
    %30 = tpu.matmul %28, %29, %cst_16 {dimension_numbers = #tpu.dot_dimension_numbers<[1], [0], [0], [1], [0, 0, 1, 1], [], []>} : vector<256x16xbf16>, vector<16x64xbf16>, vector<256x64xf32> -> vector<256x64xf32>
    %c0_17 = arith.constant 0 : index
    %c0_18 = arith.constant 0 : index
    %31 = vector.load %arg16[%c0_17, %c0_18] : memref<256x64xbf16, #tpu.memory_space<vmem>>, vector<256x64xbf16>
    %32 = arith.extf %31 : vector<256x64xbf16> to vector<256x64xf32>
    %33 = arith.mulf %30, %32 : vector<256x64xf32>
    %34 = arith.truncf %33 : vector<256x64xf32> to vector<256x64xbf16>
    %cst_19 = arith.constant dense<0.000000e+00> : vector<16x64xf32>
    %35 = tpu.matmul %27, %34, %cst_19 {dimension_numbers = #tpu.dot_dimension_numbers<[1], [0], [0], [1], [0, 0, 1, 1], [], []>} : vector<16x256xbf16>, vector<256x64xbf16>, vector<16x64xf32> -> vector<16x64xf32>
    %c0_20 = arith.constant 0 : index
    %c0_21 = arith.constant 0 : index
    %36 = vector.load %arg16[%c0_20, %c0_21] : memref<256x64xbf16, #tpu.memory_space<vmem>>, vector<256x64xbf16>
    %cst_22 = arith.constant dense<0.000000e+00> : vector<16x64xf32>
    %37 = tpu.matmul %27, %36, %cst_22 {dimension_numbers = #tpu.dot_dimension_numbers<[1], [0], [0], [1], [0, 0, 1, 1], [], []>} : vector<16x256xbf16>, vector<256x64xbf16>, vector<16x64xf32> -> vector<16x64xf32>
    %38 = tpu.reciprocal %37 {approx = true} : vector<16x64xf32> -> vector<16x64xf32>
    %39 = arith.mulf %35, %38 : vector<16x64xf32>
    %40 = arith.truncf %39 : vector<16x64xf32> to vector<16x64xbf16>
    %c0_23 = arith.constant 0 : index
    %c0_24 = arith.constant 0 : index
    %41 = vector.load %arg3[%c0_23, %c0_24] : memref<64x64xbf16, #tpu.memory_space<vmem>>, vector<64x64xbf16>
    %cst_25 = arith.constant dense<0.000000e+00> : vector<16x64xf32>
    %42 = tpu.matmul %40, %41, %cst_25 {dimension_numbers = #tpu.dot_dimension_numbers<[1], [0], [0], [1], [0, 0, 1, 1], [], []>} : vector<16x64xbf16>, vector<64x64xbf16>, vector<16x64xf32> -> vector<16x64xf32>
    %c0_26 = arith.constant 0 : index
    %c0_27 = arith.constant 0 : index
    %43 = vector.load %arg4[%c0_26, %c0_27] : memref<1x64xf32, #tpu.memory_space<vmem>>, vector<1x64xf32>
    %44 = vector.broadcast %43 : vector<1x64xf32> to vector<16x64xf32>
    %45 = arith.addf %42, %44 : vector<16x64xf32>
    %46 = arith.addf %0, %45 : vector<16x64xf32>
    %cst_28 = arith.constant dense<0.000000e+00> : vector<16xf32>
    %47 = vector.multi_reduction <add>, %46, %cst_28 [1] : vector<16x64xf32> to vector<16xf32>
    %48 = vector.shape_cast %47 : vector<16xf32> to vector<16x1xf32>
    %cst_29 = arith.constant 6.400000e+01 : f32
    %49 = vector.broadcast %cst_29 : f32 to vector<16x1xf32>
    %50 = arith.divf %48, %49 : vector<16x1xf32>
    %51 = vector.broadcast %50 : vector<16x1xf32> to vector<16x64xf32>
    %52 = arith.subf %46, %51 : vector<16x64xf32>
    %53 = arith.mulf %52, %52 : vector<16x64xf32>
    %cst_30 = arith.constant dense<0.000000e+00> : vector<16xf32>
    %54 = vector.multi_reduction <add>, %53, %cst_30 [1] : vector<16x64xf32> to vector<16xf32>
    %55 = vector.shape_cast %54 : vector<16xf32> to vector<16x1xf32>
    %cst_31 = arith.constant 6.400000e+01 : f32
    %56 = vector.broadcast %cst_31 : f32 to vector<16x1xf32>
    %57 = arith.divf %55, %56 : vector<16x1xf32>
    %58 = vector.broadcast %50 : vector<16x1xf32> to vector<16x64xf32>
    %59 = arith.subf %46, %58 : vector<16x64xf32>
    %cst_32 = arith.constant 9.99999974E-6 : f32
    %60 = vector.broadcast %cst_32 : f32 to vector<16x1xf32>
    %61 = arith.addf %57, %60 : vector<16x1xf32>
    %62 = math.rsqrt %61 : vector<16x1xf32>
    %63 = vector.broadcast %62 : vector<16x1xf32> to vector<16x64xf32>
    %64 = arith.mulf %59, %63 : vector<16x64xf32>
    %c0_33 = arith.constant 0 : index
    %c0_34 = arith.constant 0 : index
    %65 = vector.load %arg9[%c0_33, %c0_34] : memref<1x64xf32, #tpu.memory_space<vmem>>, vector<1x64xf32>
    %66 = vector.broadcast %65 : vector<1x64xf32> to vector<16x64xf32>
    %67 = arith.mulf %64, %66 : vector<16x64xf32>
    %c0_35 = arith.constant 0 : index
    %c0_36 = arith.constant 0 : index
    %68 = vector.load %arg10[%c0_35, %c0_36] : memref<1x64xf32, #tpu.memory_space<vmem>>, vector<1x64xf32>
    %69 = vector.broadcast %68 : vector<1x64xf32> to vector<16x64xf32>
    %70 = arith.addf %67, %69 : vector<16x64xf32>
    %71 = arith.truncf %70 : vector<16x64xf32> to vector<16x64xbf16>
    %c0_37 = arith.constant 0 : index
    %c0_38 = arith.constant 0 : index
    %72 = vector.load %arg5[%c0_37, %c0_38] : memref<64x128xbf16, #tpu.memory_space<vmem>>, vector<64x128xbf16>
    %cst_39 = arith.constant dense<0.000000e+00> : vector<16x128xf32>
    %73 = tpu.matmul %71, %72, %cst_39 {dimension_numbers = #tpu.dot_dimension_numbers<[1], [0], [0], [1], [0, 0, 1, 1], [], []>} : vector<16x64xbf16>, vector<64x128xbf16>, vector<16x128xf32> -> vector<16x128xf32>
    %c0_40 = arith.constant 0 : index
    %c0_41 = arith.constant 0 : index
    %74 = vector.load %arg6[%c0_40, %c0_41] : memref<1x128xf32, #tpu.memory_space<vmem>>, vector<1x128xf32>
    %75 = vector.broadcast %74 : vector<1x128xf32> to vector<16x128xf32>
    %76 = arith.addf %73, %75 : vector<16x128xf32>
    %cst_42 = arith.constant 0.000000e+00 : f32
    %77 = vector.broadcast %cst_42 : f32 to vector<16x128xf32>
    %78 = arith.maximumf %76, %77 : vector<16x128xf32>
    %79 = arith.truncf %78 : vector<16x128xf32> to vector<16x128xbf16>
    %c0_43 = arith.constant 0 : index
    %c0_44 = arith.constant 0 : index
    %80 = vector.load %arg7[%c0_43, %c0_44] : memref<128x64xbf16, #tpu.memory_space<vmem>>, vector<128x64xbf16>
    %cst_45 = arith.constant dense<0.000000e+00> : vector<16x64xf32>
    %81 = tpu.matmul %79, %80, %cst_45 {dimension_numbers = #tpu.dot_dimension_numbers<[1], [0], [0], [1], [0, 0, 1, 1], [], []>} : vector<16x128xbf16>, vector<128x64xbf16>, vector<16x64xf32> -> vector<16x64xf32>
    %c0_46 = arith.constant 0 : index
    %c0_47 = arith.constant 0 : index
    %82 = vector.load %arg8[%c0_46, %c0_47] : memref<1x64xf32, #tpu.memory_space<vmem>>, vector<1x64xf32>
    %83 = vector.broadcast %82 : vector<1x64xf32> to vector<16x64xf32>
    %84 = arith.addf %81, %83 : vector<16x64xf32>
    %85 = arith.addf %70, %84 : vector<16x64xf32>
    %cst_48 = arith.constant dense<0.000000e+00> : vector<16xf32>
    %86 = vector.multi_reduction <add>, %85, %cst_48 [1] : vector<16x64xf32> to vector<16xf32>
    %87 = vector.shape_cast %86 : vector<16xf32> to vector<16x1xf32>
    %cst_49 = arith.constant 6.400000e+01 : f32
    %88 = vector.broadcast %cst_49 : f32 to vector<16x1xf32>
    %89 = arith.divf %87, %88 : vector<16x1xf32>
    %90 = vector.broadcast %89 : vector<16x1xf32> to vector<16x64xf32>
    %91 = arith.subf %85, %90 : vector<16x64xf32>
    %92 = arith.mulf %91, %91 : vector<16x64xf32>
    %cst_50 = arith.constant dense<0.000000e+00> : vector<16xf32>
    %93 = vector.multi_reduction <add>, %92, %cst_50 [1] : vector<16x64xf32> to vector<16xf32>
    %94 = vector.shape_cast %93 : vector<16xf32> to vector<16x1xf32>
    %cst_51 = arith.constant 6.400000e+01 : f32
    %95 = vector.broadcast %cst_51 : f32 to vector<16x1xf32>
    %96 = arith.divf %94, %95 : vector<16x1xf32>
    %97 = vector.broadcast %89 : vector<16x1xf32> to vector<16x64xf32>
    %98 = arith.subf %85, %97 : vector<16x64xf32>
    %cst_52 = arith.constant 9.99999974E-6 : f32
    %99 = vector.broadcast %cst_52 : f32 to vector<16x1xf32>
    %100 = arith.addf %96, %99 : vector<16x1xf32>
    %101 = math.rsqrt %100 : vector<16x1xf32>
    %102 = vector.broadcast %101 : vector<16x1xf32> to vector<16x64xf32>
    %103 = arith.mulf %98, %102 : vector<16x64xf32>
    %c0_53 = arith.constant 0 : index
    %c0_54 = arith.constant 0 : index
    %104 = vector.load %arg11[%c0_53, %c0_54] : memref<1x64xf32, #tpu.memory_space<vmem>>, vector<1x64xf32>
    %105 = vector.broadcast %104 : vector<1x64xf32> to vector<16x64xf32>
    %106 = arith.mulf %103, %105 : vector<16x64xf32>
    %c0_55 = arith.constant 0 : index
    %c0_56 = arith.constant 0 : index
    %107 = vector.load %arg12[%c0_55, %c0_56] : memref<1x64xf32, #tpu.memory_space<vmem>>, vector<1x64xf32>
    %108 = vector.broadcast %107 : vector<1x64xf32> to vector<16x64xf32>
    %109 = arith.addf %106, %108 : vector<16x64xf32>
    %c0_57 = arith.constant 0 : index
    %c0_58 = arith.constant 0 : index
    %110 = vector.load %arg18[%c0_57, %c0_58] : memref<16x64xf32, #tpu.memory_space<vmem>>, vector<16x64xf32>
    tpu.vector_store %arg18[%c0_57, %c0_58], %109 {strides = array<i32>} : memref<16x64xf32, #tpu.memory_space<vmem>>, vector<16x64xf32>,
    return
  }
}

</mosaic_0001>

<bundles_post_ra>
// kernel: mul.9
= control target key start
LH: loop header
LB: loop body
LE: loop exit
PB: predicated region body
PF: predicated region fallthrough
CT: control target
= control target key end

     0   :  { %3 = vsyncpa [#allocation1], 0  ;;  %s58_s9 = smov [#allocation0]   ;;  %s98_s0 = inlined_call_operand.hbm [shape: f32[1,192], index: 0, kind: input, shape index: {}]   ;;  %s99_s1 = inlined_call_operand.vmem [shape: f32[1,192], index: 1, kind: input, shape index: {}]   ;;  %s100_s2 = inlined_call_operand.vmem [shape: f32[1,192], index: 2, kind: output, shape index: {}]  }
   0x1   :  { %s8_s10 = sshll.u32 %s58_s9, 4  ;;  %s34_s13 = scalar_lea.hbm %s98_s0, 32  ;;  %s9_s10 = int_to_ptr.vmem [resolvable:$true] %s8_s10 }
   0x2   :  { %p35_p0 = scmp.ne.s32.totalorder %s98_s0, %s34_s13  ;;  %p38_p1 = scmp.lt.u32.totalorder %s34_s13, %s98_s0 }
   0x4   :  { %p40_p2 = pnand %p38_p1, %p35_p0 }
   0x6   :  { %43 = shalt.err (!%p40_p2)
}
   0x7   :  { %s44_s18 = scalar_lea.vmem %s9_s10, 32  ;;  %p49_p4 = scmp.lt.s32.totalorder %s9_s10, %s9_s10 }
   0x8   :  { %p45_p3 = scmp.ne.s32.totalorder %s9_s10, %s44_s18  ;;  %p50_p5 = scmp.lt.s32.totalorder %s44_s18, %s44_s18 }
   0xa   :  { %p51_p6 = por %p50_p5, %p49_p4 }
   0xc   :  { %p52_p7 = pnand %p51_p6, %p45_p3 }
   0xe   :  { %55 = shalt.err (!%p52_p7)
}
   0xf   :  { %11 = dma.hbm_to_vmem [thread:$0]  %s98_s0, 32, %s9_s10, [#allocation1]  }
  0x10   :  { %56 = dma.done.wait [#allocation1], 32  }
  0x11   :  { %57 = vsyncadd [#allocation1], 4294967264  ;;  %v13_v0 = vld [vmem:[#allocation0] sm:$0x1]  ;;  %v21_v2 = vld [vmem:[#allocation0 + $0x1] sm:$0x1] }
  0x12   :  { %v14_v1 = vld [vmem:[%s99_s1] sm:$0x1]  ;;  %v31_v4 = vld [vmem:[%s99_s1 + $0x1] sm:$0x1] }
  0x13   :  { %v17_v3 = vmul.f32 %v14_v1, %v13_v0  ;;  %v26_v5 = vmul.f32 %v31_v4, %v21_v2 }
  0x15   :  { %19 = vst [vmem:[%s100_s2] sm:$0x1] %v17_v3  ;;  %32 = vst [vmem:[%s100_s2 + $0x1] sm:$0x1] %v26_v5 }
  0x16   :  { %30 = vsyncpa [#allocation1], 1 }

// kernel: transformer_encoder_layer.1
= control target key start
LH: loop header
LB: loop body
LE: loop exit
PB: predicated region body
PF: predicated region fallthrough
CT: control target
= control target key end

     0   :  { %s2408_s0 = inlined_call_operand.vmem [shape: f32[16,64], index: 0, kind: input, shape index: {}]   ;;  %s2409_s1 = inlined_call_operand.vmem [shape: bf16[64,192], index: 1, kind: input, shape index: {}]   ;;  %s2410_s2 = inlined_call_operand.vmem [shape: f32[1,192], index: 2, kind: input, shape index: {}]   ;;  %s2411_s3 = inlined_call_operand.vmem [shape: bf16[64,64], index: 3, kind: input, shape index: {}]   ;;  %s2412_s4 = inlined_call_operand.vmem [shape: f32[1,64], index: 4, kind: input, shape index: {}]   ;;  %s2413_s5 = inlined_call_operand.vmem [shape: bf16[64,128], index: 5, kind: input, shape index: {}]   ;;  %s2414_s6 = inlined_call_operand.vmem [shape: f32[1,128], index: 6, kind: input, shape index: {}]   ;;  %s2415_s7 = inlined_call_operand.vmem [shape: bf16[128,64], index: 7, kind: input, shape index: {}]   ;;  %s2416_s8 = inlined_call_operand.vmem [shape: f32[1,64], index: 8, kind: input, shape index: {}]   ;;  %s2417_s9 = inlined_call_operand.vmem [shape: f32[1,64], index: 9, kind: input, shape index: {}]   ;;  %s2418_s10 = inlined_call_operand.vmem [shape: f32[1,64], index: 10, kind: input, shape index: {}]   ;;  %s2419_s11 = inlined_call_operand.vmem [shape: f32[1,64], index: 11, kind: input, shape index: {}]   ;;  %s2420_s12 = inlined_call_operand.vmem [shape: f32[1,64], index: 12, kind: input, shape index: {}]   ;;  %s2421_s13 = inlined_call_operand.vmem [shape: bf16[16,256], index: 13, kind: input, shape index: {}]   ;;  %s2422_s14 = inlined_call_operand.vmem [shape: bf16[256,16], index: 14, kind: input, shape index: {}]   ;;  %s2423_s15 = inlined_call_operand.vmem [shape: bf16[64,256], index: 15, kind: input, shape index: {}]   ;;  %s2424_s16 = inlined_call_operand.vmem [shape: bf16[256,64], index: 16, kind: input, shape index: {}]   ;;  %s2425_s17 = inlined_call_operand.vmem [shape: f32[16,256], index: 17, kind: input, shape index: {}]   ;;  %s2426_s18 = inlined_call_operand.hbm [shape: f32[16,64], index: 18, kind: output, shape index: {}]  }
   0x1   :  { %2429 = sst [smem:[#allocation5_spill]] %s2408_s0 }
   0x2   :  { %2430 = sst [smem:[#allocation6_spill]] %s2409_s1 }
   0x3   :  { %2431 = sst [smem:[#allocation7_spill]] %s2410_s2 }
   0x4   :  { %s2432_s29 = sld [smem:[#allocation6_spill]]  ;;  %v1821_v2 = vmov 0   ;;  %vm124_vm0 = vcmask 523264   ;;  %s2433_s19 = sld [smem:[#allocation5_spill]] }
   0x5   :  { %160 = vmatprep.mubr.bf16.mxu0 %v1821_v2  ;;  %292 = vmatprep.mubr.bf16.mxu1 %v1821_v2 }
   0xa   :  { %v1698_v0 = vld [vmem:[%s2432_s29 + $0x4] ss:$8 sps:$4 sm:$0xff]   ;;  %v1700_v1 = vld [vmem:[%s2432_s29] ss:$8 sps:$4 sm:$0xff]   ;;  %v1701_v3 = vld [vmem:[%s2432_s29 + $0x14] ss:$8 sps:$4 sm:$0xff]  }
   0xb   :  { %128 = vmatprep.subr.bf16.mxu0 %v1698_v0  ;;  %v1703_v4 = vld [vmem:[%s2432_s29 + $0x10] ss:$8 sps:$4 sm:$0xff]   ;;  %v1704_v5 = vld [vmem:[%s2432_s29 + $0x24] ss:$8 sps:$4 sm:$0xff]   ;;  %v1706_v6 = vld [vmem:[%s2432_s29 + $0x20] ss:$8 sps:$4 sm:$0xff]  }
   0xc   :  { %129 = vmatpush1.bf16.msra.mxu0 %v1700_v1  ;;  %v1707_v7 = vld [vmem:[%s2432_s29 + $0x34] ss:$8 sps:$4 sm:$0xff]   ;;  %v1709_v8 = vld [vmem:[%s2432_s29 + $0x30] ss:$8 sps:$4 sm:$0xff]   ;;  %v1952_v9 = vld [vmem:[%s2433_s19] sm:$0xff] }
   0xd   :  { %130 = vmatprep.subr.bf16.mxu0 %v1701_v3  ;;  %v1957_v10 = vld [vmem:[%s2433_s19 + $0x8] sm:$0xff] }
   0xe   :  { %v63_v11 = vpack.c.bf16 %v1957_v10, %v1952_v9 }
  0x10   :  { %131 = vmatpush1.bf16.msra.mxu0 %v1703_v4 }
  0x11   :  { %132 = vmatprep.subr.bf16.mxu0 %v1704_v5 }
  0x14   :  { %133 = vmatpush1.bf16.msra.mxu0 %v1706_v6 }
  0x15   :  { %134 = vmatprep.subr.bf16.mxu0 %v1707_v7 }
  0x18   :  { %135 = vmatpush1.bf16.msra.mxu0 %v1709_v8 }
  0x1b   :  { %1450 = vmatmul.mubr.msk.bf16.vlgmr.msra.gmra.mrb[0].mxu0 %vm124_vm0, %v63_v11 }
  0x1c   :  { %272 = vmatprep.mubr.bf16.mxu0 %v1821_v2 }
  0x1d   :  { %23 = vsyncpa [#allocation3], 0  ;;  %v1710_v12 = vld [vmem:[%s2421_s13 + $0x4] ss:$8 sps:$4 sm:$0xff]   ;;  %v1712_v13 = vld [vmem:[%s2421_s13] ss:$8 sps:$4 sm:$0xff]   ;;  %v74_v14 = vlaneseq }
  0x1e   :  { %1689 = vmatprep.subr.bf16.mxu1 %v1710_v12  ;;  %240 = vmatprep.subr.bf16.mxu0 %v1710_v12  ;;  %s2434_s25 = sld [smem:[#allocation7_spill]]  ;;  %s1822_s13 = smov 64   ;;  %vm227_vm1 = vcmask 130048   ;;  %v1713_v45 = vld [vmem:[%s2422_s14] sm:$0xff]   ;;  %v1714_v46 = vld [vmem:[%s2422_s14 + $0x8] sm:$0xff]   ;;  %v1715_v47 = vld [vmem:[%s2422_s14 + $0x10] sm:$0xff]  }
  0x1f   :  { %1690 = vmatpush1.bf16.msra.mxu1 %v1712_v13  ;;  %241 = vmatpush1.bf16.msra.mxu0 %v1712_v13  ;;  %v75_v15 = vshrl.u32 %v74_v14, 7  ;;  %v1716_v48 = vld [vmem:[%s2422_s14 + $0x18] sm:$0xff]   ;;  %v1717_v49 = vld [vmem:[%s2422_s14 + $0x20] sm:$0xff]   ;;  %v1718_v50 = vld [vmem:[%s2422_s14 + $0x28] sm:$0xff]   ;;  %vm1824_vm2 = vmmov 0  }
  0x20   :  { %v1719_v51 = vld [vmem:[%s2422_s14 + $0x30] sm:$0xff]   ;;  %v1720_v52 = vld [vmem:[%s2422_s14 + $0x38] sm:$0xff]   ;;  %v1721_v53 = vld [vmem:[%s2422_s14 + $0x40] sm:$0xff]  }
  0x21   :  { %v76_v16 = vsub.s32 0, %v75_v15  ;;  %v80_v18 = vsub.s32 1, %v75_v15  ;;  %v1722_v54 = vld [vmem:[%s2422_s14 + $0x48] sm:$0xff]   ;;  %v1723_v55 = vld [vmem:[%s2422_s14 + $0x50] sm:$0xff]   ;;  %v1724_v56 = vld [vmem:[%s2422_s14 + $0x58] sm:$0xff]  }
  0x22   :  { %v1725_v57 = vld [vmem:[%s2422_s14 + $0x60] sm:$0xff]   ;;  %v1726_v58 = vld [vmem:[%s2422_s14 + $0x68] sm:$0xff]   ;;  %v1727_v59 = vld [vmem:[%s2422_s14 + $0x70] sm:$0xff]  }
  0x23   :  { %v1728_v60 = vld [vmem:[%s2422_s14 + $0x78] sm:$0xff]   ;;  %v313_v61 = vld [vmem:[%s2423_s15] sm:$0xff]  ;;  %v314_v62 = vld [vmem:[%s2423_s15 + $0x8] sm:$0xff] }
  0x24   :  { %v72_v17 = vld [vmem:[%s2434_s25] sm:$0x3]  ;;  %v321_v63 = vunpack.c.l.bf16 %v313_v61  ;;  %v323_v0 = vunpack.c.l.bf16 %v314_v62  ;;  %v324_v3 = vunpack.c.h.bf16 %v314_v62  ;;  %v315_v13 = vld [vmem:[%s2423_s15 + $0x10] sm:$0xff]  ;;  %v316_v14 = vld [vmem:[%s2423_s15 + $0x18] sm:$0xff]  ;;  %s1825_s25 = smov [#allocation2]  }
  0x25   :  { %v77_v19 = vrot.slane %v72_v17, %v76_v16  ;;  %v81_v21 = vrot.slane %v72_v17, %v80_v18  ;;  %v325_v17 = vunpack.c.l.bf16 %v315_v13  ;;  %v327_v18 = vunpack.c.l.bf16 %v316_v14 }
  0xee   :  { %v162_v20 = vpop.f32.mrb[0].mxu0 }
  0xef   :  { %v1972_v22 = vadd.f32 %v162_v20, %v77_v19  ;;  %v164_v23 = vpop.f32.mrb[1].mxu0  ;;  %v326_v20 = vunpack.c.h.bf16 %v315_v13 }
  0xf0   :  { %v166_v24 = vpop.f32.mrb[2].mxu0  ;;  %v165_v27 = vadd.f32 %v164_v23, %v81_v21 }
  0xf1   :  { %v1974_v25 = vadd.f32 %v166_v24, %v77_v19  ;;  %v168_v26 = vpop.f32.mrb[3].mxu0  ;;  %173 = vrot.lane.b32.xlu0 %v1972_v22, %s1822_s13 }
  0xf2   :  { %v169_v28 = vadd.f32 %v168_v26, %v81_v21  ;;  %v328_v21 = vunpack.c.h.bf16 %v316_v14 }
  0xf3   :  { %v361_v29 = vpack.c.bf16 %v1974_v25, %v1972_v22 }
  0xf4   :  { %v464_v30 = vpack.c.bf16 %v169_v28, %v165_v27 }
  0xf5   :  { %175 = vrot.lane.b32.xlu0 %v1974_v25, %s1822_s13 }
  0xf6   :  { %1611 = vmatprep.subr.bf16.mxu1 %v464_v30 }
 0x163   :  { %v174_v31 = vpop.permute.xlu0 %173 }
 0x164   :  { %179 = vxpose.xlu1.b32.start [1/2] (short) (narrow) %v174_v31, 64 }
 0x167   :  { %v176_v32 = vpop.permute.xlu0 %175 }
 0x168   :  { %180 = vxpose.xlu1.b32.end [2/2] (short) (narrow) %v176_v32, 64  ;;  %v317_v32 = vld [vmem:[%s2423_s15 + $0x20] sm:$0xff] }
 0x1e4   :  { %v195_v33 = vpop.trf.xlu1 }
 0x1e8   :  { %v196_v34 = vpop.trf.xlu1 }
 0x1e9   :  { %v211_v35 = vpack.c.bf16 %v196_v34, %v195_v33  ;;  %v318_v33 = vld [vmem:[%s2423_s15 + $0x28] sm:$0xff] }
 0x1eb   :  { %1453 = vmatmul.mubr.msk.bf16.vlgmr.msra.gmra.mrb[4].mxu0 %vm227_vm1, %v211_v35 }
 0x1ec   :  { %v197_v36 = vpop.trf.xlu1  ;;  %282 = vmatprep.mubr.bf16.mxu0 %v1821_v2 }
 0x1f0   :  { %v198_v37 = vpop.trf.xlu1 }
 0x1f1   :  { %v212_v38 = vpack.c.bf16 %v198_v37, %v197_v36  ;;  %v329_v36 = vunpack.c.l.bf16 %v317_v32  ;;  %v331_v37 = vunpack.c.l.bf16 %v318_v33 }
 0x1f3   :  { %1454 = vmatmul.mubr.msk.bf16.gmra.mrb[8].mxu0 %vm227_vm1, %v212_v38 }
 0x1f4   :  { %v199_v39 = vpop.trf.xlu1  ;;  %401 = vmatprep.mubr.bf16.mxu0 %v1821_v2 }
 0x1f8   :  { %v200_v40 = vpop.trf.xlu1 }
 0x1f9   :  { %v213_v41 = vpack.c.bf16 %v200_v40, %v199_v39  ;;  %v330_v39 = vunpack.c.h.bf16 %v317_v32  ;;  %v332_v40 = vunpack.c.h.bf16 %v318_v33  ;;  %v2131_v32 = vld [vmem:[%s2424_s16 + $0x20] sm:$0xff]  }
 0x1fb   :  { %1455 = vmatmul.mubr.msk.bf16.vlgmr.msra.gmra.mrb[0].mxu1 %vm227_vm1, %v213_v41 }
 0x1fc   :  { %1612 = vmatpush3.bf16.msra.mxu1 %v464_v30  ;;  %v201_v42 = vpop.trf.xlu1  ;;  %302 = vmatprep.mubr.bf16.mxu1 %v1821_v2  ;;  %v322_v2 = vunpack.c.h.bf16 %v313_v61 }
 0x200   :  { %v202_v43 = vpop.trf.xlu1 }
 0x201   :  { %v214_v44 = vpack.c.bf16 %v202_v43, %v201_v42 }
 0x203   :  { %1456 = vmatmul.mubr.msk.bf16.gmra.mrb[4].mxu1 %vm227_vm1, %v214_v44 }
 0x204   :  { %1613 = vmatprep.mubr.msk.bf16.mxu1 %vm227_vm1, %v1713_v45 }
 0x20b   :  { %1614 = vmatmul.mubr.msk.bf16.vlgmr.msra.gmra.mrb[8].mxu1 %vm227_vm1, %v1714_v46 }
 0x20c   :  { %1617 = vmatprep.mubr.msk.bf16.mxu1 %vm227_vm1, %v1715_v47 }
 0x213   :  { %1618 = vmatmul.mubr.msk.bf16.gmra.mrb[12].mxu1 %vm227_vm1, %v1716_v48  ;;  %v319_v48 = vld [vmem:[%s2423_s15 + $0x30] sm:$0xff] }
 0x214   :  { %1621 = vmatprep.mubr.msk.bf16.mxu1 %vm227_vm1, %v1717_v49  ;;  %v320_v49 = vld [vmem:[%s2423_s15 + $0x38] sm:$0xff]  ;;  %s1431_s15 = sshll.u32 %s1825_s25, 4  ;;  %s1432_s15 = int_to_ptr.vmem [resolvable:$true] %s1431_s15 }
 0x215   :  { %s1797_s13 = scalar_lea.vmem %s1432_s15, 256  ;;  %p1802_p1 = scmp.lt.s32.totalorder %s1432_s15, %s1432_s15 }
 0x216   :  { %p1798_p0 = scmp.ne.s32.totalorder %s1432_s15, %s1797_s13  ;;  %p1803_p2 = scmp.lt.s32.totalorder %s1797_s13, %s1797_s13 }
 0x218   :  { %p1804_p3 = por %p1803_p2, %p1802_p1 }
 0x21a   :  { %p1805_p4 = pnand %p1804_p3, %p1798_p0 }
 0x21b   :  { %1622 = vmatmul.mubr.msk.bf16.gmra.mrb[16].mxu1 %vm227_vm1, %v1718_v50 }
 0x21c   :  { %1625 = vmatprep.mubr.msk.bf16.mxu1 %vm227_vm1, %v1719_v51 }
 0x223   :  { %1626 = vmatmul.mubr.msk.bf16.gmra.mrb[20].mxu1 %vm227_vm1, %v1720_v52  ;;  %v333_v52 = vunpack.c.l.bf16 %v319_v48 }
 0x224   :  { %1629 = vmatprep.mubr.msk.bf16.mxu1 %vm227_vm1, %v1721_v53  ;;  %v335_v53 = vunpack.c.l.bf16 %v320_v49 }
 0x22b   :  { %1630 = vmatmul.mubr.msk.bf16.gmra.mrb[24].mxu1 %vm227_vm1, %v1722_v54 }
 0x22c   :  { %1633 = vmatprep.mubr.msk.bf16.mxu1 %vm227_vm1, %v1723_v55  ;;  %v334_v55 = vunpack.c.h.bf16 %v319_v48 }
 0x233   :  { %1634 = vmatmul.mubr.msk.bf16.gmra.mrb[28].mxu1 %vm227_vm1, %v1724_v56  ;;  %v336_v56 = vunpack.c.h.bf16 %v320_v49 }
 0x234   :  { %1637 = vmatprep.mubr.msk.bf16.mxu1 %vm227_vm1, %v1725_v57 }
 0x23b   :  { %1638 = vmatmul.mubr.msk.bf16.gmra.mrb[32].mxu1 %vm227_vm1, %v1726_v58 }
 0x23c   :  { %1641 = vmatprep.mubr.msk.bf16.mxu1 %vm227_vm1, %v1727_v59 }
 0x243   :  { %1642 = vmatmul.mubr.msk.bf16.gmra.mrb[36].mxu1 %vm227_vm1, %v1728_v60 }
 0x2be   :  { %v274_v1 = vpop.f32.mrb[4].mxu0 }
 0x2bf   :  { %v276_v4 = vpop.f32.mrb[5].mxu0  ;;  %v337_v6 = vmul.f32 %v321_v63, %v274_v1 }
 0x2c0   :  { %v278_v5 = vpop.f32.mrb[6].mxu0  ;;  %v338_v11 = vmul.f32 %v322_v2, %v276_v4  ;;  %v2087_v4 = vld [vmem:[%s2424_s16] sm:$0xff]  }
 0x2c1   :  { %v339_v7 = vmul.f32 %v323_v0, %v278_v5  ;;  %v280_v8 = vpop.f32.mrb[7].mxu0  ;;  %v2092_v5 = vld [vmem:[%s2424_s16 + $0x18] sm:$0xff]  }
 0x2c2   :  { %v340_v12 = vmul.f32 %v324_v3, %v280_v8  ;;  %v2082_v3 = vld [vmem:[%s2424_s16 + $0x8] sm:$0xff]  }
 0x2c3   :  { %v353_v15 = vpack.c.bf16 %v339_v7, %v337_v6  ;;  %v788_v22 = vunpack.c.l.bf16 %v2082_v3  ;;  %v789_v6 = vunpack.c.h.bf16 %v2082_v3  ;;  %v2100_v7 = vld [vmem:[%s2424_s16 + $0x10] sm:$0xff]  }
 0x2c4   :  { %v354_v16 = vpack.c.bf16 %v340_v12, %v338_v11  ;;  %v787_v11 = vunpack.c.h.bf16 %v2087_v4  ;;  %v792_v12 = vunpack.c.l.bf16 %v2092_v5  ;;  %v790_v13 = vunpack.c.l.bf16 %v2100_v7 }
 0x2c6   :  { %v284_v19 = vpop.f32.mrb[8].mxu0  ;;  %369 = vmatprep.subr.bf16.mxu0 %v354_v16 }
 0x2c7   :  { %v286_v23 = vpop.f32.mrb[9].mxu0  ;;  %370 = vmatpush1.bf16.msra.mxu0 %v353_v15  ;;  %v341_v26 = vmul.f32 %v325_v17, %v284_v19 }
 0x2c8   :  { %v288_v24 = vpop.f32.mrb[10].mxu0  ;;  %v342_v30 = vmul.f32 %v326_v20, %v286_v23 }
 0x2c9   :  { %v343_v27 = vmul.f32 %v327_v18, %v288_v24  ;;  %v290_v28 = vpop.f32.mrb[11].mxu0  ;;  %v793_v18 = vunpack.c.h.bf16 %v2092_v5 }
 0x2ca   :  { %v344_v31 = vmul.f32 %v328_v21, %v290_v28  ;;  %v791_v21 = vunpack.c.h.bf16 %v2100_v7 }
 0x2cb   :  { %v355_v34 = vpack.c.bf16 %v343_v27, %v341_v26  ;;  %v2122_v27 = vld [vmem:[%s2424_s16 + $0x28] sm:$0xff]  }
 0x2cc   :  { %v356_v35 = vpack.c.bf16 %v344_v31, %v342_v30 }
 0x2ce   :  { %v294_v38 = vpop.f32.mrb[0].mxu1  ;;  %371 = vmatprep.subr.bf16.mxu0 %v356_v35 }
 0x2cf   :  { %v296_v41 = vpop.f32.mrb[1].mxu1  ;;  %372 = vmatpush1.bf16.msra.mxu0 %v355_v34  ;;  %v345_v43 = vmul.f32 %v329_v36, %v294_v38  ;;  %v796_v36 = vunpack.c.l.bf16 %v2122_v27  ;;  %v794_v38 = vunpack.c.l.bf16 %v2131_v32 }
 0x2d0   :  { %v298_v42 = vpop.f32.mrb[2].mxu1  ;;  %v346_v46 = vmul.f32 %v330_v39, %v296_v41 }
 0x2d1   :  { %v347_v44 = vmul.f32 %v331_v37, %v298_v42  ;;  %v300_v45 = vpop.f32.mrb[3].mxu1  ;;  %v795_v42 = vunpack.c.h.bf16 %v2131_v32 }
 0x2d2   :  { %v348_v47 = vmul.f32 %v332_v40, %v300_v45  ;;  %v797_v40 = vunpack.c.h.bf16 %v2122_v27 }
 0x2d3   :  { %v357_v50 = vpack.c.bf16 %v347_v44, %v345_v43 }
 0x2d4   :  { %v358_v51 = vpack.c.bf16 %v348_v47, %v346_v46  ;;  %v2152_v47 = vld [vmem:[%s2424_s16 + $0x38] sm:$0xff]  }
 0x2d6   :  { %v304_v54 = vpop.f32.mrb[4].mxu1  ;;  %373 = vmatprep.subr.bf16.mxu0 %v358_v51 }
 0x2d7   :  { %v306_v57 = vpop.f32.mrb[5].mxu1  ;;  %374 = vmatpush1.bf16.msra.mxu0 %v357_v50  ;;  %v349_v59 = vmul.f32 %v333_v52, %v304_v54  ;;  %v2159_v50 = vld [vmem:[%s2424_s16 + $0x30] sm:$0xff]  }
 0x2d8   :  { %v308_v58 = vpop.f32.mrb[6].mxu1  ;;  %v350_v62 = vmul.f32 %v334_v55, %v306_v57  ;;  %v798_v55 = vunpack.c.l.bf16 %v2159_v50 }
 0x2d9   :  { %v351_v60 = vmul.f32 %v335_v53, %v308_v58  ;;  %v310_v61 = vpop.f32.mrb[7].mxu1  ;;  %v800_v53 = vunpack.c.l.bf16 %v2152_v47  ;;  %v799_v58 = vunpack.c.h.bf16 %v2159_v50 }
 0x2da   :  { %v352_v63 = vmul.f32 %v336_v56, %v310_v61  ;;  %v801_v56 = vunpack.c.h.bf16 %v2152_v47 }
 0x2db   :  { %v359_v0 = vpack.c.bf16 %v351_v60, %v349_v59 }
 0x2dc   :  { %v360_v1 = vpack.c.bf16 %v352_v63, %v350_v62  ;;  %v2178_v63 = vld [vmem:[%s2424_s16 + $0x48] sm:$0xff]  }
 0x2de   :  { %375 = vmatprep.subr.bf16.mxu0 %v360_v1  ;;  %v1615_v2 = vpop.f32.mrb[8].mxu1 }
 0x2df   :  { %376 = vmatpush1.bf16.msra.mxu0 %v359_v0  ;;  %v627_v25 = vpop.f32.mrb[9].mxu1  ;;  %v2105_v14 = vmul.f32 %v1615_v2, %v788_v22  ;;  %v2185_v2 = vld [vmem:[%s2424_s16 + $0x40] sm:$0xff]  }
 0x2e0   :  { %v1616_v8 = vpop.f32.mrb[10].mxu1 }
 0x2e1   :  { %v2109_v16 = vmul.f32 %v1616_v8, %v789_v6  ;;  %v630_v17 = vpop.f32.mrb[11].mxu1  ;;  %v802_v8 = vunpack.c.l.bf16 %v2185_v2 }
 0x2e2   :  { %1457 = vmatmul.mubr.msk.bf16.vlgmr.msra.gmra.mrb[12].mxu0 %vm124_vm0, %v361_v29  ;;  %v786_v29 = vunpack.c.l.bf16 %v2087_v4  ;;  %v2112_v19 = vmul.f32 %v787_v11, %v630_v17  ;;  %v805_v11 = vunpack.c.h.bf16 %v2178_v63 }
 0x2e3   :  { %v851_v23 = vpack.c.bf16 %v2109_v16, %v2105_v14  ;;  %v2237_v16 = vld [vmem:[%s2424_s16 + $0x78] sm:$0xff]  }
 0x2e4   :  { %v2107_v15 = vmul.f32 %v786_v29, %v627_v25  ;;  %v804_v29 = vunpack.c.l.bf16 %v2178_v63 }
 0x2e6   :  { %v1619_v20 = vpop.f32.mrb[12].mxu1  ;;  %v850_v28 = vpack.c.bf16 %v2112_v19, %v2107_v15 }
 0x2e7   :  { %v2117_v24 = vmul.f32 %v1619_v20, %v792_v12  ;;  %v643_v26 = vpop.f32.mrb[13].mxu1 }
 0x2e8   :  { %v2126_v30 = vmul.f32 %v790_v13, %v643_v26  ;;  %v1620_v31 = vpop.f32.mrb[14].mxu1  ;;  %v803_v13 = vunpack.c.h.bf16 %v2185_v2  ;;  %v2200_v26 = vld [vmem:[%s2424_s16 + $0x58] sm:$0xff]  }
 0x2e9   :  { %v2133_v33 = vmul.f32 %v1620_v31, %v793_v18  ;;  %v646_v34 = vpop.f32.mrb[15].mxu1 }
 0x2ea   :  { %v2135_v35 = vmul.f32 %v791_v21, %v646_v34 }
 0x2eb   :  { %v853_v37 = vpack.c.bf16 %v2133_v33, %v2117_v24 }
 0x2ec   :  { %v852_v39 = vpack.c.bf16 %v2135_v35, %v2126_v30  ;;  %v816_v30 = vunpack.c.l.bf16 %v2237_v16 }
 0x2ee   :  { %v1623_v41 = vpop.f32.mrb[16].mxu1 }
 0x2ef   :  { %v2145_v43 = vmul.f32 %v1623_v41, %v796_v36  ;;  %v659_v44 = vpop.f32.mrb[17].mxu1  ;;  %v2205_v36 = vld [vmem:[%s2424_s16 + $0x50] sm:$0xff]   ;;  %v808_v41 = vunpack.c.l.bf16 %v2200_v26 }
 0x2f0   :  { %v2147_v45 = vmul.f32 %v794_v38, %v659_v44  ;;  %v1624_v46 = vpop.f32.mrb[18].mxu1  ;;  %v806_v44 = vunpack.c.l.bf16 %v2205_v36 }
 0x2f1   :  { %v2154_v48 = vmul.f32 %v1624_v46, %v797_v40  ;;  %v662_v49 = vpop.f32.mrb[19].mxu1  ;;  %v809_v46 = vunpack.c.h.bf16 %v2200_v26 }
 0x2f2   :  { %v2161_v51 = vmul.f32 %v795_v42, %v662_v49 }
 0x2f3   :  { %v855_v52 = vpack.c.bf16 %v2154_v48, %v2145_v43  ;;  %v363_v43 = vld [vmem:[%s2425_s17 + $0x8] sm:$0xff] }
 0x2f4   :  { %v854_v54 = vpack.c.bf16 %v2161_v51, %v2147_v45  ;;  %v362_v45 = vld [vmem:[%s2425_s17] sm:$0xff]  ;;  %v364_v51 = vld [vmem:[%s2425_s17 + $0x10] sm:$0xff] }
 0x2f6   :  { %v1627_v57 = vpop.f32.mrb[20].mxu1 }
 0x2f7   :  { %v2171_v59 = vmul.f32 %v1627_v57, %v800_v53  ;;  %v675_v60 = vpop.f32.mrb[21].mxu1  ;;  %v807_v53 = vunpack.c.h.bf16 %v2205_v36 }
 0x2f8   :  { %v2173_v61 = vmul.f32 %v798_v55, %v675_v60  ;;  %v1628_v62 = vpop.f32.mrb[22].mxu1  ;;  %v2217_v60 = vld [vmem:[%s2424_s16 + $0x68] sm:$0xff]  }
 0x2f9   :  { %v2180_v0 = vmul.f32 %v1628_v62, %v801_v56  ;;  %v678_v1 = vpop.f32.mrb[23].mxu1  ;;  %v812_v15 = vunpack.c.l.bf16 %v2217_v60 }
 0x2fa   :  { %v2187_v22 = vmul.f32 %v799_v58, %v678_v1 }
 0x2fb   :  { %v857_v25 = vpack.c.bf16 %v2180_v0, %v2171_v59  ;;  %v365_v59 = vld [vmem:[%s2425_s17 + $0x18] sm:$0xff] }
 0x2fc   :  { %v856_v6 = vpack.c.bf16 %v2187_v22, %v2173_v61 }
 0x2fe   :  { %v1631_v12 = vpop.f32.mrb[24].mxu1 }
 0x2ff   :  { %v836_v17 = vmul.f32 %v1631_v12, %v804_v29  ;;  %v691_v18 = vpop.f32.mrb[25].mxu1  ;;  %v2222_v29 = vld [vmem:[%s2424_s16 + $0x60] sm:$0xff]   ;;  %v813_v12 = vunpack.c.h.bf16 %v2217_v60 }
 0x300   :  { %v834_v20 = vmul.f32 %v802_v8, %v691_v18  ;;  %v1632_v21 = vpop.f32.mrb[26].mxu1 }
 0x301   :  { %v837_v31 = vmul.f32 %v1632_v21, %v805_v11  ;;  %v694_v34 = vpop.f32.mrb[27].mxu1 }
 0x302   :  { %v835_v38 = vmul.f32 %v803_v13, %v694_v34  ;;  %v2242_v34 = vld [vmem:[%s2424_s16 + $0x70] sm:$0xff]  }
 0x303   :  { %v859_v40 = vpack.c.bf16 %v837_v31, %v836_v17  ;;  %v811_v17 = vunpack.c.h.bf16 %v2222_v29 }
 0x304   :  { %v858_v42 = vpack.c.bf16 %v835_v38, %v834_v20 }
 0x306   :  { %v1635_v49 = vpop.f32.mrb[28].mxu1  ;;  %1548 = vmatprep.subr.bf16.mxu0 %v858_v42 }
 0x307   :  { %v840_v55 = vmul.f32 %v1635_v49, %v808_v41  ;;  %v707_v56 = vpop.f32.mrb[29].mxu1  ;;  %1549 = vmatpush3.bf16.msra.mxu0 %v850_v28  ;;  %v810_v28 = vunpack.c.l.bf16 %v2222_v29  ;;  %v817_v41 = vunpack.c.h.bf16 %v2237_v16 }
 0x308   :  { %v838_v57 = vmul.f32 %v806_v44, %v707_v56  ;;  %v1636_v58 = vpop.f32.mrb[30].mxu1  ;;  %1550 = vmatprep.subr.bf16.mxu0 %v859_v40  ;;  %v815_v44 = vunpack.c.h.bf16 %v2242_v34 }
 0x309   :  { %v841_v62 = vmul.f32 %v1636_v58, %v809_v46  ;;  %v710_v1 = vpop.f32.mrb[31].mxu1 }
 0x30a   :  { %v839_v8 = vmul.f32 %v807_v53, %v710_v1  ;;  %v1745_v1 = vld [vmem:[%s2411_s3] sm:$0xff]  }
 0x30b   :  { %v861_v11 = vpack.c.bf16 %v841_v62, %v840_v55  ;;  %1551 = vmatpush3.bf16.msra.mxu0 %v851_v23 }
 0x30c   :  { %v860_v19 = vpack.c.bf16 %v839_v8, %v838_v57  ;;  %v1823_v8 = vmov 0.0  }
 0x30d   :  { %1645 = vmatprep.subr.bf16.mxu1 %v1823_v8  ;;  %1653 = vmatprep.mubr.msk.bf16.mxu1 %vm1824_vm2, %v1823_v8 }
 0x30e   :  { %v1639_v13 = vpop.f32.mrb[32].mxu1  ;;  %1552 = vmatprep.subr.bf16.mxu0 %v860_v19  ;;  %1646 = vmatpush3.bf16.msra.mxu1 %v1745_v1  ;;  %v1754_v1 = vld [vmem:[%s2415_s7 + $0x8] sm:$0xff]  }
 0x30f   :  { %v844_v18 = vmul.f32 %v1639_v13, %v812_v15  ;;  %v723_v20 = vpop.f32.mrb[33].mxu1  ;;  %1553 = vmatpush3.bf16.msra.mxu0 %v852_v39  ;;  %v814_v39 = vunpack.c.l.bf16 %v2242_v34  ;;  %1647 = vmatprep.subr.bf16.mxu1 %v1823_v8 }
 0x310   :  { %v842_v21 = vmul.f32 %v810_v28, %v723_v20  ;;  %v1640_v14 = vpop.f32.mrb[34].mxu1  ;;  %1554 = vmatprep.subr.bf16.mxu0 %v861_v11 }
 0x311   :  { %v845_v23 = vmul.f32 %v1640_v14, %v813_v12  ;;  %v726_v31 = vpop.f32.mrb[35].mxu1 }
 0x312   :  { %v843_v38 = vmul.f32 %v811_v17, %v726_v31 }
 0x313   :  { %v863_v40 = vpack.c.bf16 %v845_v23, %v844_v18  ;;  %1555 = vmatpush3.bf16.msra.mxu0 %v853_v37 }
 0x314   :  { %v862_v35 = vpack.c.bf16 %v843_v38, %v842_v21 }
 0x316   :  { %v1643_v42 = vpop.f32.mrb[36].mxu1  ;;  %1556 = vmatprep.subr.bf16.mxu0 %v862_v35 }
 0x317   :  { %v848_v46 = vmul.f32 %v1643_v42, %v816_v30  ;;  %v739_v49 = vpop.f32.mrb[37].mxu1  ;;  %1557 = vmatpush3.bf16.msra.mxu0 %v854_v54 }
 0x318   :  { %v846_v53 = vmul.f32 %v814_v39, %v739_v49  ;;  %v1644_v24 = vpop.f32.mrb[38].mxu1  ;;  %1558 = vmatprep.subr.bf16.mxu0 %v863_v40 }
 0x319   :  { %v849_v33 = vmul.f32 %v1644_v24, %v817_v41  ;;  %v742_v37 = vpop.f32.mrb[39].mxu1 }
 0x31a   :  { %v847_v55 = vmul.f32 %v815_v44, %v742_v37  ;;  %v1506_v44 = vld [vmem:[%s2412_s4] ss:$0 sm:$0xff] }
 0x31b   :  { %v865_v56 = vpack.c.bf16 %v849_v33, %v848_v46  ;;  %1559 = vmatpush3.bf16.msra.mxu0 %v855_v52 }
 0x31c   :  { %v864_v57 = vpack.c.bf16 %v847_v55, %v846_v53 }
 0x31e   :  { %1560 = vmatprep.subr.bf16.mxu0 %v864_v57 }
 0x31f   :  { %1561 = vmatpush3.bf16.msra.mxu0 %v856_v6 }
 0x320   :  { %1562 = vmatprep.subr.bf16.mxu0 %v865_v56 }
 0x323   :  { %1563 = vmatpush3.bf16.msra.mxu0 %v857_v25 }
 0x324   :  { %1570 = vmatprep.subr.bf16.mxu0 %v2185_v2 }
 0x3b5   :  { %v403_v48 = vpop.f32.mrb[12].mxu0 }
 0x3b6   :  { %v404_v52 = vadd.f32 %v403_v48, %v362_v45  ;;  %v405_v54 = vpop.f32.mrb[13].mxu0 }
 0x3b7   :  { %v406_v61 = vadd.f32 %v405_v54, %v363_v43  ;;  %v407_v0 = vpop.f32.mrb[14].mxu0 }
 0x3b8   :  { %v408_v22 = vadd.f32 %v407_v0, %v364_v51  ;;  %v409_v25 = vpop.f32.mrb[15].mxu0 }
 0x3b9   :  { %v410_v6 = vadd.f32 %v409_v25, %v365_v59  ;;  %v412_v58 = vmax.f32 %v404_v52, %v406_v61  ;;  %v1750_v25 = vld [vmem:[%s2413_s5 + $0x8] sm:$0xff]  }
 0x3bb   :  { %413 = vmax.xlane.f32.xlu0 %v412_v58  ;;  %v415_v62 = vmax.f32 %v408_v22, %v410_v6  ;;  %v1752_v58 = vld [vmem:[%s2413_s5 + $0x18] sm:$0xff]  }
 0x3bd   :  { %416 = vmax.xlane.f32.xlu1 %v415_v62  ;;  %v1753_v62 = vld [vmem:[%s2415_s7] sm:$0xff]  }
 0x448   :  { %v414_v11 = vpop.xlane.xlu0 %413 }
 0x449   :  { %v418_v15 = vsub.f32 %v404_v52, %v414_v11  ;;  %v419_v19 = vsub.f32 %v406_v61, %v414_v11  ;;  %v1755_v11 = vld [vmem:[%s2415_s7 + $0x10] sm:$0xff]  }
 0x44a   :  { %v417_v28 = vpop.xlane.xlu1 %416 }
 0x44b   :  { %v422_v12 = vmul.f32 1.442695, %v418_v15  ;;  %v424_v13 = vmul.f32 1.442695, %v419_v19  ;;  %v420_v17 = vsub.f32 %v408_v22, %v417_v28  ;;  %v421_v18 = vsub.f32 %v410_v6, %v417_v28  ;;  %v1751_v6 = vld [vmem:[%s2413_s5 + $0x10] sm:$0xff]   ;;  %v1756_v15 = vld [vmem:[%s2415_s7 + $0x18] sm:$0xff]  }
 0x44c   :  { %v1757_v19 = vld [vmem:[%s2415_s7 + $0x20] sm:$0xff]   ;;  %v1758_v28 = vld [vmem:[%s2415_s7 + $0x28] sm:$0xff]  }
 0x44d   :  { %1777 = vpow2.f32 %v422_v12  ;;  %v426_v2 = vmul.f32 1.442695, %v420_v17  ;;  %v428_v20 = vmul.f32 1.442695, %v421_v18 }
 0x44e   :  { %1779 = vpow2.f32 %v424_v13 }
 0x44f   :  { %1781 = vpow2.f32 %v426_v2 }
 0x450   :  { %1783 = vpow2.f32 %v428_v20 }
 0x457   :  { %v1778_v21 = vpop.eup %1777 }
 0x458   :  { %v1780_v14 = vpop.eup %1779 }
 0x459   :  { %v1782_v23 = vpop.eup %1781 }
 0x45a   :  { %v1784_v31 = vpop.eup %1783  ;;  %v430_v38 = vpack.c.bf16 %v1782_v23, %v1778_v21  ;;  %v1512_v23 = vld [vmem:[%s2417_s9] ss:$0 sm:$0xff] }
 0x45b   :  { %v431_v40 = vpack.c.bf16 %v1784_v31, %v1780_v14 }
 0x45d   :  { %898 = vmatprep.mubr.bf16.mxu0 %v431_v40 }
 0x45e   :  { %899 = vmatmul.mubr.bf16.vlgmr.msra.gmra.mrb[16].mxu0 %v430_v38 }
 0x45f   :  { %1571 = vmatpush3.bf16.msra.mxu0 %v2087_v4  ;;  %1035 = vmatprep.mubr.bf16.mxu0 %v431_v40  ;;  %v1747_v4 = vld [vmem:[%s2411_s3 + $0x10] sm:$0xff]  }
 0x460   :  { %1572 = vmatprep.subr.bf16.mxu0 %v2178_v63 }
 0x463   :  { %1573 = vmatpush3.bf16.msra.mxu0 %v2082_v3  ;;  %v1746_v3 = vld [vmem:[%s2411_s3 + $0x8] sm:$0xff]  }
 0x464   :  { %1574 = vmatprep.subr.bf16.mxu0 %v2205_v36  ;;  %1648 = vmatpush3.bf16.msra.mxu1 %v1746_v3  ;;  %v1513_v3 = vld [vmem:[%s2418_s10] ss:$0 sm:$0xff] }
 0x465   :  { %1649 = vmatprep.subr.bf16.mxu1 %v1823_v8 }
 0x467   :  { %1575 = vmatpush3.bf16.msra.mxu0 %v2100_v7 }
 0x468   :  { %1576 = vmatprep.subr.bf16.mxu0 %v2200_v26  ;;  %1650 = vmatpush3.bf16.msra.mxu1 %v1747_v4 }
 0x469   :  { %1651 = vmatprep.subr.bf16.mxu1 %v1823_v8 }
 0x46b   :  { %1577 = vmatpush3.bf16.msra.mxu0 %v2092_v5  ;;  %v1748_v5 = vld [vmem:[%s2411_s3 + $0x18] sm:$0xff]  }
 0x46c   :  { %1578 = vmatprep.subr.bf16.mxu0 %v2222_v29  ;;  %1652 = vmatpush3.bf16.msra.mxu1 %v1748_v5 }
 0x46d   :  { %1669 = vmatprep.subr.bf16.mxu1 %v1823_v8 }
 0x46f   :  { %1579 = vmatpush3.bf16.msra.mxu0 %v2131_v32 }
 0x470   :  { %1580 = vmatprep.subr.bf16.mxu0 %v2217_v60 }
 0x473   :  { %1581 = vmatpush3.bf16.msra.mxu0 %v2122_v27 }
 0x474   :  { %1582 = vmatprep.subr.bf16.mxu0 %v2242_v34 }
 0x477   :  { %1583 = vmatpush3.bf16.msra.mxu0 %v2159_v50 }
 0x478   :  { %1584 = vmatprep.subr.bf16.mxu0 %v2237_v16 }
 0x47b   :  { %1585 = vmatpush3.bf16.msra.mxu0 %v2152_v47 }
 0x47c   :  { %1657 = vmatprep.subr.bf16.mxu0 %v1823_v8 }
 0x47e   :  { %1036 = vmatmul.mubr.bf16.vlgmr.msra.gmra.mrb[20].mxu0 %v430_v38 }
 0x47f   :  { %1665 = vmatprep.mubr.msk.bf16.mxu0 %vm1824_vm2, %v1823_v8 }
 0x531   :  { %v1564_v7 = vpop.f32.mrb[16].mxu0 }
 0x532   :  { %v1565_v27 = vpop.f32.mrb[17].mxu0 }
 0x533   :  { %v1566_v32 = vadd.f32 %v1565_v27, %v1564_v7  ;;  %v1567_v47 = vpop.f32.mrb[18].mxu0 }
 0x534   :  { %v1568_v50 = vpop.f32.mrb[19].mxu0 }
 0x535   :  { %v1569_v63 = vadd.f32 %v1568_v50, %v1567_v47  ;;  %v1760_v47 = vld [vmem:[%s2415_s7 + $0x38] sm:$0xff]   ;;  %v1514_v50 = vld [vmem:[%s2414_s6] ss:$0 sm:$0xff] }
 0x551   :  { %v1586_v26 = vpop.f32.mrb[20].mxu0 }
 0x552   :  { %v1587_v36 = vpop.f32.mrb[21].mxu0 }
 0x553   :  { %v1588_v60 = vadd.f32 %v1587_v36, %v1586_v26  ;;  %v1589_v29 = vpop.f32.mrb[22].mxu0 }
 0x554   :  { %v1590_v16 = vpop.f32.mrb[23].mxu0 }
 0x555   :  { %1785 = vrcp.f32 %v1588_v60  ;;  %v1591_v34 = vadd.f32 %v1590_v16, %v1589_v29 }
 0x557   :  { %1787 = vrcp.f32 %v1591_v34 }
 0x55f   :  { %v1786_v30 = vpop.eup %1785 }
 0x560   :  { %v1046_v35 = vmul.f32 %v1786_v30, %v1566_v32  ;;  %v1759_v32 = vld [vmem:[%s2415_s7 + $0x30] sm:$0xff]  }
 0x561   :  { %v1788_v39 = vpop.eup %1787 }
 0x562   :  { %v1047_v41 = vmul.f32 %v1788_v39, %v1569_v63 }
 0x564   :  { %v1048_v42 = vpack.c.bf16 %v1047_v41, %v1046_v35 }
 0x566   :  { %1654 = vmatmul.mubr.msk.bf16.vlgmr.msra.gmra.mrb[40].mxu1 %vm124_vm0, %v1048_v42 }
 0x567   :  { %1685 = vmatprep.mubr.msk.bf16.mxu1 %vm1824_vm2, %v1823_v8  ;;  %1670 = vmatpush3.bf16.msra.mxu1 %v1753_v62 }
 0x568   :  { %1671 = vmatprep.subr.bf16.mxu1 %v1823_v8 }
 0x56b   :  { %1672 = vmatpush3.bf16.msra.mxu1 %v1754_v1  ;;  %v1530_v1 = vld [vmem:[%s2420_s12] ss:$0 sm:$0xff] }
 0x56c   :  { %1673 = vmatprep.subr.bf16.mxu1 %v1823_v8 }
 0x56f   :  { %1674 = vmatpush3.bf16.msra.mxu1 %v1755_v11 }
 0x570   :  { %1675 = vmatprep.subr.bf16.mxu1 %v1823_v8 }
 0x573   :  { %1676 = vmatpush3.bf16.msra.mxu1 %v1756_v15 }
 0x574   :  { %1677 = vmatprep.subr.bf16.mxu1 %v1823_v8 }
 0x577   :  { %1678 = vmatpush3.bf16.msra.mxu1 %v1757_v19 }
 0x578   :  { %1679 = vmatprep.subr.bf16.mxu1 %v1823_v8 }
 0x57b   :  { %1680 = vmatpush3.bf16.msra.mxu1 %v1758_v28 }
 0x57c   :  { %1681 = vmatprep.subr.bf16.mxu1 %v1823_v8 }
 0x57f   :  { %1682 = vmatpush3.bf16.msra.mxu1 %v1759_v32 }
 0x580   :  { %1683 = vmatprep.subr.bf16.mxu1 %v1823_v8 }
 0x583   :  { %1684 = vmatpush3.bf16.msra.mxu1 %v1760_v47 }
 0x639   :  { %v1125_v46 = vpop.f32.mrb[40].mxu1 }
 0x63a   :  { %v1126_v49 = vadd.f32 %v1506_v44, %v1125_v46  ;;  %v1655_v53 = vpop.f32.mrb[41].mxu1 }
 0x63b   :  { %v1128_v24 = vpop.f32.mrb[42].mxu1 }
 0x63c   :  { %v1129_v33 = vadd.f32 %v1506_v44, %v1128_v24  ;;  %v1656_v37 = vpop.f32.mrb[43].mxu1  ;;  %v1132_v55 = vadd.f32 %v1126_v49, %v1952_v9 }
 0x63e   :  { %v1134_v56 = vsel %vm124_vm0, %v1132_v55, 0.0  ;;  %v1133_v57 = vadd.f32 %v1129_v33, %v1957_v10  ;;  %v1749_v10 = vld [vmem:[%s2413_s5] sm:$0xff]  }
 0x63f   :  { %1135 = vadd.xlane.f32.xlu0 %v1134_v56  ;;  %1658 = vmatpush3.bf16.msra.mxu0 %v1749_v10 }
 0x640   :  { %v1137_v45 = vsel %vm124_vm0, %v1133_v57, 0.0  ;;  %1659 = vmatprep.subr.bf16.mxu0 %v1823_v8 }
 0x643   :  { %1138 = vadd.xlane.f32.xlu0 %v1137_v45  ;;  %1660 = vmatpush3.bf16.msra.mxu0 %v1750_v25 }
 0x644   :  { %1661 = vmatprep.subr.bf16.mxu0 %v1823_v8 }
 0x647   :  { %1662 = vmatpush3.bf16.msra.mxu0 %v1751_v6 }
 0x648   :  { %1663 = vmatprep.subr.bf16.mxu0 %v1823_v8  ;;  %v1520_v8 = vld [vmem:[%s2416_s8] ss:$0 sm:$0xff] }
 0x64b   :  { %1664 = vmatpush3.bf16.msra.mxu0 %v1752_v58  ;;  %v1529_v58 = vld [vmem:[%s2419_s11] ss:$0 sm:$0xff] }
 0x6cc   :  { %v1136_v43 = vpop.xlane.xlu0 %1135 }
 0x6cd   :  { %v1141_v48 = vmul.f32 0.015625, %v1136_v43 }
 0x6cf   :  { %v1143_v51 = vsub.f32 %v1132_v55, %v1141_v48 }
 0x6d0   :  { %v1139_v52 = vpop.xlane.xlu0 %1138 }
 0x6d1   :  { %v1142_v54 = vmul.f32 0.015625, %v1139_v52  ;;  %v1145_v59 = vmul.f32 %v1143_v51, %v1143_v51 }
 0x6d3   :  { %v1144_v61 = vsub.f32 %v1133_v57, %v1142_v54  ;;  %v1147_v0 = vsel %vm124_vm0, %v1145_v59, 0.0 }
 0x6d4   :  { %1148 = vadd.xlane.f32.xlu0 %v1147_v0 }
 0x6d5   :  { %v1146_v22 = vmul.f32 %v1144_v61, %v1144_v61 }
 0x6d7   :  { %v1150_v9 = vsel %vm124_vm0, %v1146_v22, 0.0 }
 0x6d8   :  { %1151 = vadd.xlane.f32.xlu0 %v1150_v9 }
 0x761   :  { %v1149_v12 = vpop.xlane.xlu0 %1148 }
 0x762   :  { %v1153_v13 = vmul.f32 0.015625, %v1149_v12 }
 0x764   :  { %v1155_v17 = vadd.f32 1e-05, %v1153_v13 }
 0x765   :  { %v1152_v18 = vpop.xlane.xlu0 %1151 }
 0x766   :  { %1789 = vrsqrt.f32 %v1155_v17  ;;  %v1154_v2 = vmul.f32 0.015625, %v1152_v18 }
 0x768   :  { %v1156_v20 = vadd.f32 1e-05, %v1154_v2 }
 0x76a   :  { %1791 = vrsqrt.f32 %v1156_v20 }
 0x770   :  { %v1790_v21 = vpop.eup %1789 }
 0x771   :  { %v1159_v14 = vmul.f32 %v1790_v21, %v1143_v51 }
 0x773   :  { %v1168_v38 = vmul.f32 %v1512_v23, %v1159_v14 }
 0x774   :  { %v1792_v31 = vpop.eup %1791 }
 0x775   :  { %v1160_v40 = vmul.f32 %v1792_v31, %v1144_v61  ;;  %v1177_v5 = vadd.f32 %v1513_v3, %v1168_v38 }
 0x777   :  { %v1169_v4 = vmul.f32 %v1512_v23, %v1160_v40 }
 0x779   :  { %v1178_v7 = vadd.f32 %v1513_v3, %v1169_v4 }
 0x77b   :  { %v1179_v27 = vpack.c.bf16 %v1178_v7, %v1177_v5 }
 0x77d   :  { %1666 = vmatmul.mubr.msk.bf16.vlgmr.msra.gmra.mrb[24].mxu0 %vm124_vm0, %v1179_v27 }
 0x850   :  { %v1256_v63 = vpop.f32.mrb[24].mxu0 }
 0x851   :  { %v1257_v26 = vadd.f32 %v1514_v50, %v1256_v63  ;;  %v1667_v36 = vpop.f32.mrb[25].mxu0 }
 0x852   :  { %v1259_v60 = vpop.f32.mrb[26].mxu0 }
 0x853   :  { %v1260_v29 = vadd.f32 %v1514_v50, %v1259_v60  ;;  %v1668_v16 = vpop.f32.mrb[27].mxu0  ;;  %v1263_v34 = vmax.f32 %v1257_v26, 0.0 }
 0x855   :  { %v1264_v30 = vmax.f32 %v1260_v29, 0.0 }
 0x857   :  { %v1265_v35 = vpack.c.bf16 %v1264_v30, %v1263_v34 }
 0x859   :  { %1686 = vmatmul.mubr.bf16.vlgmr.msra.gmra.mrb[44].mxu1 %v1265_v35 }
 0x92c   :  { %v1371_v39 = vpop.f32.mrb[44].mxu1 }
 0x92d   :  { %v1372_v41 = vadd.f32 %v1520_v8, %v1371_v39  ;;  %v1687_v42 = vpop.f32.mrb[45].mxu1 }
 0x92e   :  { %v1374_v44 = vpop.f32.mrb[46].mxu1 }
 0x92f   :  { %v1375_v46 = vadd.f32 %v1520_v8, %v1374_v44  ;;  %v1688_v49 = vpop.f32.mrb[47].mxu1  ;;  %v1378_v53 = vadd.f32 %v1372_v41, %v1177_v5 }
 0x931   :  { %v1380_v24 = vsel %vm124_vm0, %v1378_v53, 0.0  ;;  %v1379_v33 = vadd.f32 %v1375_v46, %v1178_v7 }
 0x932   :  { %1381 = vadd.xlane.f32.xlu0 %v1380_v24 }
 0x933   :  { %v1383_v37 = vsel %vm124_vm0, %v1379_v33, 0.0 }
 0x936   :  { %1384 = vadd.xlane.f32.xlu0 %v1383_v37 }
 0x9bf   :  { %v1382_v55 = vpop.xlane.xlu0 %1381 }
 0x9c0   :  { %v1386_v56 = vmul.f32 0.015625, %v1382_v55 }
 0x9c2   :  { %v1388_v57 = vsub.f32 %v1378_v53, %v1386_v56 }
 0x9c3   :  { %v1385_v45 = vpop.xlane.xlu0 %1384 }
 0x9c4   :  { %v1387_v43 = vmul.f32 0.015625, %v1385_v45  ;;  %v1390_v48 = vmul.f32 %v1388_v57, %v1388_v57 }
 0x9c6   :  { %v1389_v51 = vsub.f32 %v1379_v33, %v1387_v43  ;;  %v1392_v52 = vsel %vm124_vm0, %v1390_v48, 0.0 }
 0x9c7   :  { %1393 = vadd.xlane.f32.xlu0 %v1392_v52 }
 0x9c8   :  { %v1391_v54 = vmul.f32 %v1389_v51, %v1389_v51 }
 0x9ca   :  { %v1395_v59 = vsel %vm124_vm0, %v1391_v54, 0.0 }
 0x9cb   :  { %1396 = vadd.xlane.f32.xlu0 %v1395_v59 }
 0xa54   :  { %v1394_v61 = vpop.xlane.xlu0 %1393 }
 0xa55   :  { %v1398_v0 = vmul.f32 0.015625, %v1394_v61 }
 0xa57   :  { %v1400_v22 = vadd.f32 1e-05, %v1398_v0 }
 0xa58   :  { %v1397_v9 = vpop.xlane.xlu0 %1396 }
 0xa59   :  { %1793 = vrsqrt.f32 %v1400_v22  ;;  %v1399_v10 = vmul.f32 0.015625, %v1397_v9 }
 0xa5b   :  { %v1401_v25 = vadd.f32 1e-05, %v1399_v10 }
 0xa5d   :  { %1795 = vrsqrt.f32 %v1401_v25 }
 0xa63   :  { %v1794_v6 = vpop.eup %1793 }
 0xa64   :  { %v1404_v62 = vmul.f32 %v1794_v6, %v1388_v57 }
 0xa66   :  { %v1413_v11 = vmul.f32 %v1529_v58, %v1404_v62 }
 0xa67   :  { %v1796_v15 = vpop.eup %1795 }
 0xa68   :  { %v1405_v19 = vmul.f32 %v1796_v15, %v1389_v51  ;;  %v1422_v28 = vadd.f32 %v1530_v1, %v1413_v11 }
 0xa6a   :  { %v1414_v12 = vmul.f32 %v1529_v58, %v1405_v19  ;;  %1424 = vst.msk [vmem:[#allocation2] sm:$0xff] %vm124_vm0, %v1422_v28 }
 0xa6c   :  { %v1423_v13 = vadd.f32 %v1530_v1, %v1414_v12 }
 0xa6e   :  { %1425 = vst.msk [vmem:[#allocation2 + $0x8] sm:$0xff] %vm124_vm0, %v1423_v13 }
 0xa6f   :  { %1808 = shalt.err (!%p1805_p4)
}
 0xa70   :  { %s1809_s26 = scalar_lea.hbm %s2426_s18, 256 }
 0xa71   :  { %p1810_p5 = scmp.ne.s32.totalorder %s2426_s18, %s1809_s26  ;;  %p1813_p6 = scmp.lt.u32.totalorder %s1809_s26, %s2426_s18 }
 0xa73   :  { %p1815_p7 = pnand %p1813_p6, %p1810_p5 }
 0xa75   :  { %1818 = shalt.err (!%p1815_p7)
}
 0xa76   :  { %s1826_s30 = smov 128   ;;  %s1827_s14 = smov 8  }
 0xa77   :  { %1437 = dma.vmem_to_hbm [thread:$0]  %s1432_s15, 256, %s2426_s18, [#allocation3], %s1826_s30, %s1826_s30, %s1827_s14  }
 0xa78   :  { %1819 = dma.done.wait [#allocation3], 256  }
 0xa79   :  { %1820 = vsyncadd [#allocation3], 4294967040 }
 0xa7a   :  { %1441 = vsyncpa [#allocation3], 1 }

</bundles_post_ra>
